<compile_context>
chip_gen: v7x
topology: tpu7x:2x2x1
jax: 0.10.0
libtpu: 0.0.40
codegen_flags: <defaults>
</compile_context>

<pallas_src>
import functools

import jax
import jax.numpy as jnp
from jax.experimental import pallas as pl
from jax.experimental.pallas import tpu as pltpu


def _layernorm_kernel(x_ref, gb_ref, o_ref, *, eps):
    # x_ref: (TM, D)   gb_ref: (2, D) = [gamma; beta]   o_ref: (TM, D)
    x = x_ref[...].astype(jnp.float32)                 # element math in f32
    g = gb_ref[0:1, :].astype(jnp.float32)             # (1, D), read once
    b = gb_ref[1:2, :].astype(jnp.float32)             # (1, D), read once
    d_inv = 1.0 / x.shape[-1]
    # Single-pass moments: only `x` stays live, no centered (TM, D) temporary.
    s = jnp.sum(x, axis=-1, keepdims=True)
    ss = jnp.sum(x * x, axis=-1, keepdims=True)
    mean = s * d_inv
    var = ss * d_inv - mean * mean                     # biased variance (torch LayerNorm)
    inv = jax.lax.rsqrt(var + eps)                     # EUP rsqrt, off the VALU path
    o_ref[...] = ((x - mean) * inv * g + b).astype(o_ref.dtype)


def _round_up(x, m):
    return ((x + m - 1) // m) * m


def _vmem_limit_bytes():
    # v7x: 64 MiB physical -> 32 MiB; v6e/v5e: 128 MiB -> 64 MiB.
    try:
        cap = pltpu.get_tpu_info().vmem_capacity_bytes
    except Exception:
        cap = 64 * 1024 * 1024
    return min(cap // 2, 96 * 1024 * 1024)


def _pick_tile_rows(M, D, in_bytes, out_bytes, budget_bytes):
    # Double-buffered in/out pipeline tiles + ~2 f32 temporaries per element.
    per_row = D * (2 * in_bytes + 2 * out_bytes + 8)
    tm = max(8, (budget_bytes // max(per_row, 1)) // 8 * 8)
    tm = min(tm, 512)
    if M <= 8:
        return M                                       # block == full row dim
    tm = min(tm, (M // 8) * 8)                         # keep block <= array rows
    # Keep at least 2 grid steps so both v7x TensorCores get work.
    tm = min(tm, max(8, _round_up(pl.cdiv(M, 2), 8)))
    return max(tm, 8)


def layernorm(x, gamma, beta, *, eps=1e-5):
    """LayerNorm over the last dim. x: (..., D), gamma/beta: (D,)."""
    orig_shape = x.shape
    D = orig_shape[-1]
    M = 1
    for s in orig_shape[:-1]:
        M *= s
    x2d = x.reshape(M, D)                              # free reshape, no upcast/pad

    limit = _vmem_limit_bytes()
    tm = _pick_tile_rows(M, D, x.dtype.itemsize, x.dtype.itemsize,
                         budget_bytes=(limit * 3) // 4)
    grid = (pl.cdiv(M, tm),)                           # ragged last block, no jnp.pad

    gb = jnp.stack([gamma, beta], axis=0)              # one (2, D) grid-invariant input

    out = pl.pallas_call(
        functools.partial(_layernorm_kernel, eps=eps),
        out_shape=jax.ShapeDtypeStruct((M, D), x.dtype),
        grid_spec=pltpu.PrefetchScalarGridSpec(
            num_scalar_prefetch=0,
            grid=grid,
            in_specs=[
                pl.BlockSpec((tm, D), lambda i: (i, 0)),   # row tile of x
                pl.BlockSpec((2, D), lambda i: (0, 0)),    # gamma/beta (grid-invariant)
            ],
            out_specs=pl.BlockSpec((tm, D), lambda i: (i, 0)),
        ),
        compiler_params=pltpu.CompilerParams(
            dimension_semantics=("parallel",),             # megacore shards the row axis
            vmem_limit_bytes=limit,
        ),
    )(x2d, gb)

    return out.reshape(orig_shape)


def decoder_forward(x, encoder_output, src_mask, tgt_mask, gamma, beta, *, layers=()):
    """Pallas port of Decoder.forward: decoder blocks, then LayerNorm(d_model)."""
    # TODO(synk): the nn.ModuleList decoder blocks have no definition in the spec
    # (self-attn / cross-attn / FFN internals are not given), so they are applied
    # as passed-in callables and are not translated to Pallas here.
    for layer in layers:
        x = layer(x, encoder_output, src_mask, tgt_mask)
    return layernorm(x, gamma, beta, eps=1e-5)


def _reference(x, gamma, beta, eps=1e-5):
    x = x.astype(jnp.float32)
    mean = jnp.mean(x, axis=-1, keepdims=True)
    var = jnp.mean((x - mean) ** 2, axis=-1, keepdims=True)
    return (x - mean) * jax.lax.rsqrt(var + eps) * gamma + beta


if __name__ == "__main__":
    # shapes implied by the module: (batch, seq, d_model); d_model lane-dense (128)
    B, S, D = 2, 8, 128
    key = jax.random.PRNGKey(0)
    kx, ke, kg, kb = jax.random.split(key, 4)

    x = jax.random.normal(kx, (B, S, D), dtype=jnp.float32)
    encoder_output = jax.random.normal(ke, (B, S, D), dtype=jnp.float32)
    src_mask = jnp.ones((B, 1, 1, S), dtype=jnp.float32)
    tgt_mask = jnp.tril(jnp.ones((S, S), dtype=jnp.float32))[None, None]

    # non-trivial affine params so the kernel's scale/shift path is exercised
    gamma = 1.0 + 0.1 * jax.random.normal(kg, (D,), dtype=jnp.float32)
    beta = 0.1 * jax.random.normal(kb, (D,), dtype=jnp.float32)

    out = decoder_forward(x, encoder_output, src_mask, tgt_mask, gamma, beta)
    out = jax.block_until_ready(out)

    ref = _reference(x, gamma, beta)
    assert out.shape == (B, S, D)
    assert jnp.allclose(out, ref, atol=1e-4, rtol=1e-4)

    print("KERNEL_OK")
</pallas_src>

<mosaic_0001>
module attributes {stable_mosaic.version = 11 : i64} {
  func.func @_layernorm_kernel(%arg0: i32, %arg1: memref<8x128xf32, #tpu.memory_space<vmem>>, %arg2: memref<2x128xf32, #tpu.memory_space<vmem>>, %arg3: memref<8x128xf32, #tpu.memory_space<vmem>>) attributes {dimension_semantics = [#tpu.dimension_semantics<parallel>], iteration_bounds = array<i64: 2>, scalar_prefetch = 0 : i64, scratch_operands = 0 : i64, tpu.core_type = #tpu.core_type<tc>, window_params = [{transform_indices = @transform_0, window_bounds = array<i64: 8, 128>}, {pipeline_mode = #tpu.pipeline_mode<synchronous>, transform_indices = @transform_1, window_bounds = array<i64: 2, 128>}, {transform_indices = @transform_2, window_bounds = array<i64: 8, 128>}]} {
    %c0 = arith.constant 0 : index
    %c0_0 = arith.constant 0 : index
    %0 = vector.load %arg1[%c0, %c0_0] : memref<8x128xf32, #tpu.memory_space<vmem>>, vector<8x128xf32>
    %c0_1 = arith.constant 0 : index
    %c0_2 = arith.constant 0 : index
    %1 = vector.load %arg2[%c0_1, %c0_2] : memref<2x128xf32, #tpu.memory_space<vmem>>, vector<1x128xf32>
    %c1 = arith.constant 1 : index
    %c0_3 = arith.constant 0 : index
    %2 = vector.load %arg2[%c1, %c0_3] : memref<2x128xf32, #tpu.memory_space<vmem>>, vector<1x128xf32>
    %cst = arith.constant dense<0.000000e+00> : vector<8xf32>
    %3 = vector.multi_reduction <add>, %0, %cst [1] : vector<8x128xf32> to vector<8xf32>
    %4 = vector.shape_cast %3 : vector<8xf32> to vector<8x1xf32>
    %5 = arith.mulf %0, %0 : vector<8x128xf32>
    %cst_4 = arith.constant dense<0.000000e+00> : vector<8xf32>
    %6 = vector.multi_reduction <add>, %5, %cst_4 [1] : vector<8x128xf32> to vector<8xf32>
    %7 = vector.shape_cast %6 : vector<8xf32> to vector<8x1xf32>
    %cst_5 = arith.constant 7.812500e-03 : f32
    %8 = vector.broadcast %cst_5 : f32 to vector<8x1xf32>
    %9 = arith.mulf %4, %8 : vector<8x1xf32>
    %cst_6 = arith.constant 7.812500e-03 : f32
    %10 = vector.broadcast %cst_6 : f32 to vector<8x1xf32>
    %11 = arith.mulf %7, %10 : vector<8x1xf32>
    %12 = arith.mulf %9, %9 : vector<8x1xf32>
    %13 = arith.subf %11, %12 : vector<8x1xf32>
    %cst_7 = arith.constant 9.99999974E-6 : f32
    %14 = vector.broadcast %cst_7 : f32 to vector<8x1xf32>
    %15 = arith.addf %13, %14 : vector<8x1xf32>
    %16 = math.rsqrt %15 : vector<8x1xf32>
    %17 = vector.broadcast %9 : vector<8x1xf32> to vector<8x128xf32>
    %18 = arith.subf %0, %17 : vector<8x128xf32>
    %19 = vector.broadcast %16 : vector<8x1xf32> to vector<8x128xf32>
    %20 = arith.mulf %18, %19 : vector<8x128xf32>
    %21 = vector.broadcast %1 : vector<1x128xf32> to vector<8x128xf32>
    %22 = arith.mulf %20, %21 : vector<8x128xf32>
    %23 = vector.broadcast %2 : vector<1x128xf32> to vector<8x128xf32>
    %24 = arith.addf %22, %23 : vector<8x128xf32>
    %c0_8 = arith.constant 0 : index
    %c0_9 = arith.constant 0 : index
    %25 = vector.load %arg3[%c0_8, %c0_9] : memref<8x128xf32, #tpu.memory_space<vmem>>, vector<8x128xf32>
    tpu.vector_store %arg3[%c0_8, %c0_9], %24 {strides = array<i32>} : memref<8x128xf32, #tpu.memory_space<vmem>>, vector<8x128xf32>,
    return
  }
  func.func @transform_0(%arg0: i32) -> (i32, i32) {
    %c0_i32 = arith.constant 0 : i32
    %c0_i32_0 = arith.constant 0 : i32
    return %arg0, %c0_i32 : i32, i32
  }
  func.func @transform_1(%arg0: i32) -> (i32, i32) {
    %c0_i32 = arith.constant 0 : i32
    %c0_i32_0 = arith.constant 0 : i32
    %c0_i32_1 = arith.constant 0 : i32
    return %c0_i32, %c0_i32_0 : i32, i32
  }
  func.func @transform_2(%arg0: i32) -> (i32, i32) {
    %c0_i32 = arith.constant 0 : i32
    %c0_i32_0 = arith.constant 0 : i32
    return %arg0, %c0_i32 : i32, i32
  }
}

</mosaic_0001>

<bundles_post_ra>
// kernel: tpu_custom_call.1
= control target key start
LH: loop header
LB: loop body
LE: loop exit
PB: predicated region body
PF: predicated region fallthrough
CT: control target
= control target key end

     0   :  { %7 = vsyncpa [#allocation3], 0  ;;  %s614_s0 = inlined_call_operand.hbm [shape: f32[16,128], index: 0, kind: input, shape index: {}]   ;;  %s615_s1 = inlined_call_operand.vmem [shape: f32[2,128], index: 1, kind: input, shape index: {}]   ;;  %s616_s2 = inlined_call_operand.hbm [shape: f32[16,128], index: 2, kind: output, shape index: {}]  }
   0x1   :  { %9 = vsyncpa [#allocation3 + $0x1], 0 }
   0x2   :  { %10 = vsyncpa [#allocation4], 0 }
   0x3   :  { %12 = vsyncpa [#allocation4 + $0x1], 0  ;;  %s447_s9 = smov 0   ;;  %s449_s10 = smov 0  }
   0x4   :  { %s451_s11 = smov 0   ;;  %s453_s12 = smov 0  }
   0x5 LB: > { %s468_s13 = sadd.s32 4294967295, %s428_s12   ;;  %s270_s14 = sadd.s32 4294967294, %s428_s12   ;;  %s428_s12 = sphi %s453_s12, %s631_s12   ;;  %s424_s11 = sphi %s451_s11, %s630_s11   ;;  %s420_s10 = sphi %s449_s10, %s629_s10   ;;  %s416_s9 = sphi %s447_s9, %s628_s9  }
   0x6   : > { %s472_s15 = sadd.s32 1, %s428_s12   ;;  %s25_s16 = sadd.s32 1, %s424_s11 }
   0x7   : > { %s22_s17 = ssub.s32 %s428_s12, %s472_s15  ;;  %p32_p0 = scmp.ne.s32.totalorder %s424_s11, %s420_s10 }
   0x8   : > { %p23_p1 = scmp.eq.s32.totalorder %s22_s17, 0  ;;  %p33_p2 = scmp.eq.s32.totalorder %s428_s12, 0 }
   0x9   : > { %p38_p3 = scmp.ne.s32.totalorder %s420_s10, %s416_s9  ;;  %p39_p4 = scmp.eq.s32.totalorder %s468_s13, 0 }
   0xa   : > { %s484_s18 = scalar_select %p23_p1, %s424_s11, %s25_s16  }
   0xb   : > { %p486_p5 = por %p33_p2, %p32_p0  ;;  %p490_p6 = por %p39_p4, %p38_p3 }
   0xc   : > { %p83_p7 = scmp.eq.s32.totalorder %s468_s13, 1  ;;  %p89_p8 = scmp.eq.s32.totalorder %s270_s14, 1 }
   0xd   : > { %p296_p10 = scmp.lt.s32.totalorder %s428_s12, 2  ;;  %s112_s23 = sand.u32 1, %s424_s11  }
   0xe   : > { %p497_p11 = por %p83_p7, %p32_p0  ;;  %p501_p12 = por %p89_p8, %p38_p3 }
   0xf   : > { %s274_s24 = sshll.u32 %s428_s12, 7  ;;  %s273_s25 = sshll.u32 %s112_s23, 3 }
  0x10   : > { %s620_s21 = scalar_select %p497_p11, 1, 0 }
  0x11   : > { %s621_s22 = scalar_select %p501_p12, 1, 0 }
  0x12   : > { %s510_s28 = scalar_lea.hbm %s614_s0, %s274_s24  ;;  %s116_s29 = scalar_lea.vmem [#allocation2], %s273_s25 }
  0x13   : > { %s123_s30 = sshll.u32 %s116_s29, 4  ;;  %p514_p13 = pnand %p296_p10, %p486_p5  ;;  %s518_s30 = int_to_ptr.vmem [resolvable:$true] %s123_s30 }
  0x14   : > { %s113_s4 = scalar_lea.sflag [#allocation3], %s112_s23  ;;  %s332_s5 = scalar_lea.hbm %s510_s28, 128 }
  0x15   : > { %p333_p2 = scmp.ne.s32.totalorder %s510_s28, %s332_s5  ;;  %p334_p3 = pneg %p514_p13 }
  0x16   : > { %s337_s8 = scalar_lea.hbm %s614_s0, 256  ;;  %p338_p5 = scmp.lt.u32.totalorder %s510_s28, %s614_s0 }
  0x17   : > { %p335_p4 = pnand %p334_p3, %p333_p2  ;;  %p339_p8 = scmp.lt.u32.totalorder %s337_s8, %s332_s5 }
  0x18   : > { %p341_p9 = scmp.lt.u32.totalorder %s332_s5, %s510_s28 }
  0x19   : > { %p336_p7 = pneg %p335_p4  ;;  %p340_p10 = por %p339_p8, %p338_p5 }
  0x1b   : > { %p342_p0 = por %p341_p9, %p340_p10 }
  0x1d   : > { %p343_p1 = pnand %p342_p0, %p336_p7 }
  0x1f   : > { %346 = shalt.err (!%p343_p1)
}
  0x20   : > { %s347_s17 = scalar_lea.vmem %s518_s30, 128  ;;  %s430_s19 = smov [#allocation2]  }
  0x21   : > { %p348_p2 = scmp.ne.s32.totalorder %s518_s30, %s347_s17  ;;  %s352_s23 = sshll.u32 %s430_s19, 4  ;;  %s353_s23 = int_to_ptr.vmem [resolvable:$false] %s352_s23 }
  0x22   : > { %s354_s24 = scalar_lea.vmem %s353_s23, 256  ;;  %p355_p11 = scmp.lt.s32.totalorder %s518_s30, %s353_s23 }
  0x23   : > { %p350_p4 = pnand %p348_p2, %p334_p3  ;;  %p356_p5 = scmp.lt.s32.totalorder %s354_s24, %s347_s17 }
  0x25   : > { %p351_p12 = pneg %p350_p4  ;;  %p357_p8 = por %p356_p5, %p355_p11 }
  0x27   : > { %p358_p9 = pnand %p357_p8, %p351_p12 }
  0x29   : > { %361 = shalt.err (!%p358_p9)
}
  0x2a   : > { %291 = dma.hbm_to_vmem [thread:$0]  (!%p514_p13), %s510_s28, 128, %s518_s30, %s113_s4  }
  0x2b   : > { %p623_p0 = scmp.lt.s32.totalorder %s428_s12, 3  ;;  %p624_p1 = scmp.ge.s32.totalorder %s428_s12, 1 }
  0x2d   : > { %p129_p3 = pnand %p624_p1, %p623_p0 }
  0x2e   : > { %s552_s25 = sand.u32 (!%p129_p3), 1, %s420_s10  }
  0x2f   : > { %132 = sbr.rel (%p129_p3) target bundleno = 239 (0xef), region = 28  ;;  %s276_s26 = sshll.u32 (!%p129_p3), %s552_s25, 3 }
  0x30   : > { %s135_s27 = scalar_lea.sflag (!%p129_p3), [#allocation3], %s552_s25  ;;  %s138_s29 = scalar_lea.vmem (!%p129_p3), [#allocation2], %s276_s26 }
  0x36   : > { %407 = dma.done.wait (%p490_p6), %s135_s27, 128  }
  0x37   : > { %409 = vsyncadd (%p490_p6), %s135_s27, 4294967168  ;;  %v159_v0 = vld [vmem:[%s138_s29] sm:$0xff]  ;;  %s281_s4 = sshll.u32 %s468_s13, 7  ;;  %s158_s5 = scalar_lea.vmem [#allocation5], %s276_s26 }
  0x38   : > { %162 = vadd.xlane.f32.xlu0 %v159_v0  ;;  %v164_v1 = vmul.f32 %v159_v0, %v159_v0  ;;  %v278_v11 = vld [vmem:[%s615_s1] ss:$0 sm:$0xff]  ;;  %v279_v13 = vld [vmem:[%s615_s1 + $0x1] ss:$0 sm:$0xff]  ;;  %s200_s6 = sshll.u32 %s158_s5, 4  ;;  %s570_s14 = scalar_lea.hbm %s616_s2, %s281_s4  ;;  %s572_s6 = int_to_ptr.vmem [resolvable:$true] %s200_s6 }
  0x39   : > { %s187_s16 = scalar_lea.sflag [#allocation4], %s552_s25  ;;  %s362_s17 = scalar_lea.vmem %s572_s6, 128 }
  0x3a   : > { %p363_p6 = scmp.ne.s32.totalorder %s572_s6, %s362_s17  ;;  %p625_p11 = scmp.ne.s32.totalorder %s620_s21, 0 }
  0x3b   : > { %s431_s13 = smov [#allocation5]  }
  0x3c   : > { %165 = vadd.xlane.f32.xlu0 %v164_v1  ;;  %p364_p12 = pnand %p363_p6, %p625_p11  ;;  %s366_s19 = sshll.u32 %s431_s13, 4  ;;  %s367_s19 = int_to_ptr.vmem [resolvable:$false] %s366_s19 }
  0x3d   : > { %s368_s23 = scalar_lea.vmem %s367_s19, 256  ;;  %p369_p7 = scmp.lt.s32.totalorder %s572_s6, %s367_s19 }
  0x3e   : > { %p365_p13 = pneg %p364_p12  ;;  %p370_p10 = scmp.lt.s32.totalorder %s368_s23, %s362_s17 }
  0x40   : > { %p371_p2 = por %p370_p10, %p369_p7 }
  0x42   : > { %p372_p4 = pnand %p371_p2, %p365_p13 }
  0xc5   : > { %v163_v2 = vpop.xlane.xlu0 %162 }
  0xc6   : > { %v167_v3 = vmul.f32 0.0078125, %v163_v2 }
  0xc8   : > { %v169_v5 = vmul.f32 %v167_v3, %v167_v3  ;;  %v173_v9 = vsub.f32 %v159_v0, %v167_v3 }
  0xc9   : > { %v166_v4 = vpop.xlane.xlu0 %165 }
  0xca   : > { %v168_v6 = vmul.f32 0.0078125, %v166_v4 }
  0xcc   : > { %v170_v7 = vsub.f32 %v168_v6, %v169_v5 }
  0xce   : > { %v171_v8 = vadd.f32 1e-05, %v170_v7 }
  0xd0   : > { %330 = vrsqrt.f32 %v171_v8 }
  0xda   : > { %v331_v10 = vpop.eup %330 }
  0xdb   : > { %v174_v12 = vmul.f32 %v331_v10, %v173_v9 }
  0xdd   : > { %v179_v14 = vmul.f32 %v278_v11, %v174_v12 }
  0xdf   : > { %v184_v15 = vadd.f32 %v279_v13, %v179_v14 }
  0xe1   : > { %185 = vst [vmem:[%s158_s5] sm:$0xff] %v184_v15 }
  0xe2   : > { %375 = shalt.err (!%p372_p4)
}
  0xe3   : > { %s376_s24 = scalar_lea.hbm %s570_s14, 128  ;;  %s380_s27 = scalar_lea.hbm %s616_s2, 256 }
  0xe4   : > { %p377_p5 = scmp.ne.s32.totalorder %s570_s14, %s376_s24  ;;  %p381_p0 = scmp.lt.u32.totalorder %s570_s14, %s616_s2 }
  0xe5   : > { %p382_p1 = scmp.lt.u32.totalorder %s380_s27, %s376_s24  ;;  %p384_p6 = scmp.lt.u32.totalorder %s376_s24, %s570_s14 }
  0xe6   : > { %p378_p8 = pnand %p377_p5, %p625_p11 }
  0xe7   : > { %p383_p3 = por %p382_p1, %p381_p0 }
  0xe8   : > { %p379_p9 = pneg %p378_p8 }
  0xe9   : > { %p385_p12 = por %p384_p6, %p383_p3 }
  0xeb   : > { %p386_p13 = pnand %p385_p12, %p379_p9 }
  0xed   : > { %389 = shalt.err (!%p386_p13)
}
  0xee   : > { %286 = dma.vmem_to_hbm [thread:$0]  (%p625_p11), %s572_s6, 128, %s570_s14, %s187_s16  }
  0xef PF: > { %s212_s20 = sand.u32 1, %s416_s9   ;;  %p626_p7 = scmp.ne.s32.totalorder %s621_s22, 0 }
  0xf0   : > { %p627_p10 = scmp.ge.s32.totalorder %s428_s12, 2  ;;  %s213_s30 = scalar_lea.sflag [#allocation4], %s212_s20 }
  0xf2   : > { %p293_p2 = pnand %p627_p10, %p626_p7 }
  0xf4   : > { %411 = dma.done.wait (!%p293_p2), %s213_s30, 128  }
  0xf5   : > { %413 = vsyncadd (!%p293_p2), %s213_s30, 4294967168  ;;  %p15_p4 = scmp.ge.s32.totalorder %s472_s15, 4   ;;  %s628_s9 = smov %s420_s10 }
  0xf6   : > { %s629_s10 = smov %s424_s11  ;;  %s630_s11 = smov %s484_s18 }
  0xf7   : > { %s631_s12 = smov %s472_s15  ;;  %17 = sbr.rel (!%p15_p4) target bundleno = 5 (0x5), region = 73 }
  0xfe   :  { %218 = vsyncpa [#allocation3], 1 }
  0xff   :  { %220 = vsyncpa [#allocation3 + $0x1], 1 }
 0x100   :  { %221 = vsyncpa [#allocation4], 1 }
 0x101   :  { %223 = vsyncpa [#allocation4 + $0x1], 1 }

</bundles_post_ra>
